<compile_context>
chip_gen: v5e
topology: v5e:2x2
jax: 0.10.0
libtpu: 0.0.40
codegen_flags: <defaults>
</compile_context>

<pallas_src>
import jax
import jax.numpy as jnp
from jax import lax
from jax.experimental import pallas as pl
from jax.experimental.pallas import tpu as pltpu


# ----------------------------------------------------------------------------
# Kernel
# ----------------------------------------------------------------------------
def dan_kernel(x_ref, w1_ref, b1_ref, w2_ref, b2_ref, w3_ref, b3_ref, o_ref):
    cd = w1_ref.dtype
    # fc1 + ReLU   (dropout1 = identity at inference).  x arrives f32; the
    # bf16 cast happens here on the VPU instead of as a separate XLA pass.
    x = x_ref[...].astype(cd)                                  # [bt, D]
    h1 = jnp.dot(x, w1_ref[...], preferred_element_type=jnp.float32)
    h1 = jnp.maximum(h1 + b1_ref[...], 0.0)                    # [bt, Hp] f32
    # fc2 + ReLU   (dropout2 = identity at inference)
    h2 = jnp.dot(h1.astype(cd), w2_ref[...],
                 preferred_element_type=jnp.float32)
    h2 = jnp.maximum(h2 + b2_ref[...], 0.0)                    # [bt, Hp] f32
    # fc3 computed directly in transposed [C, bt] form so the final store is
    # lane-dense:  logits_t[c, i] = sum_h w3[c, h] * h2[i, h]   (A @ B^T).
    logits_t = lax.dot_general(
        w3_ref[...], h2.astype(cd),
        dimension_numbers=(((1,), (1,)), ((), ())),
        preferred_element_type=jnp.float32)                    # [C, bt] f32
    logits_t = logits_t + b3_ref[...]                          # + [C, 1] bias
    # (dropout3 = identity at inference)
    # log_softmax over the class axis (axis 0 in the transposed layout).
    m = jnp.max(logits_t, axis=0, keepdims=True)
    z = logits_t - m
    lse = jnp.log(jnp.sum(jnp.exp(z), axis=0, keepdims=True))
    o_ref[...] = (z - lse).astype(o_ref.dtype)


# ----------------------------------------------------------------------------
# Hardware-aware helpers
# ----------------------------------------------------------------------------
def _round_up(n, m):
    return ((n + m - 1) // m) * m


def _cdiv(a, b):
    return -(-a // b)


def _device_kind():
    try:
        return jax.devices()[0].device_kind.lower()
    except Exception:
        return ""


def _vmem_capacity_bytes():
    """Per-TensorCore VMEM capacity (generation-aware, conservative default)."""
    try:
        info = pltpu.get_tpu_info()
        cap = int(getattr(info, "vmem_capacity_bytes", 0) or 0)
        if cap > 0:
            return cap
    except Exception:
        pass
    kind = _device_kind()
    if "v7" in kind or "7x" in kind:
        return 64 * 1024 * 1024
    if "v5" in kind or "v6" in kind:
        return 128 * 1024 * 1024
    return 64 * 1024 * 1024  # unknown -> conservative


def _mxu_hidden_multiple():
    """v6e/v7x MXU is 256 wide; v5e's 4x128^2 MXU is happy with 128."""
    kind = _device_kind()
    if "v6" in kind or "v7" in kind or "7x" in kind:
        return 256
    return 128


def _pick_batch_tile(B, D, Hp, C, budget_bytes, max_tile=8192):
    """Largest lane-aligned batch tile that fits the VMEM budget, with at
    least 2 grid steps for moderate/large B (so both v7x TCs get work)."""
    del C  # output tile padded to 8 sublanes regardless of C

    def vmem_bytes(t):
        x_io = 2 * t * D * 4                        # double-buffered f32 x tile
        o_io = 2 * 8 * t * 4                        # dbuf out tile, 8-sublane pad
        w_b = (D * Hp + Hp * Hp + 2 * Hp) * 2       # bf16 weights
        bias = (2 * 8 * Hp + 8 * 128) * 4           # padded f32 bias tiles
        acts = t * (D * 2 + Hp * 12 + 128)          # x bf16, h1/h2 f32+bf16, temps
        return x_io + o_io + 2 * (w_b + bias) + acts  # weights counted 2x (slack)

    bt = 128
    while bt < max_tile and vmem_bytes(bt * 2) <= budget_bytes:
        bt *= 2

    if B <= 256 and B <= bt:
        return B                                    # single full-batch block
    # Keep >= 2 grid steps so "parallel" semantics can split across v7x's TCs.
    return min(bt, max(128, _round_up(_cdiv(B, 2), 128)))


# ----------------------------------------------------------------------------
# One-time parameter preparation (hoisted out of the per-call path)
# ----------------------------------------------------------------------------
def prepare_params(w1, b1, w2, b2, w3, b3, *, compute_dtype=jnp.bfloat16,
                   hidden_multiple=None):
    """Pad/transpose/cast PyTorch-layout weights once.

    w1: [H, D]  b1: [H]   (fc1)
    w2: [H, H]  b2: [H]   (fc2)
    w3: [C, H]  b3: [C]   (fc3)
    Padded hidden units get zero weights and zero bias, so ReLU keeps them at
    exactly 0 and they never contribute.
    """
    H, D = w1.shape
    C = w3.shape[0]
    if hidden_multiple is None:
        hidden_multiple = 128 if H <= 128 else _mxu_hidden_multiple()
    Hp = _round_up(max(H, 128), hidden_multiple)
    cd = jnp.dtype(compute_dtype)
    f32 = jnp.float32

    w1p = jnp.zeros((D, Hp), cd).at[:, :H].set(w1.T.astype(cd))
    b1p = jnp.zeros((1, Hp), f32).at[:, :H].set(b1.astype(f32)[None, :])
    w2p = jnp.zeros((Hp, Hp), cd).at[:H, :H].set(w2.T.astype(cd))
    b2p = jnp.zeros((1, Hp), f32).at[:, :H].set(b2.astype(f32)[None, :])
    w3p = jnp.zeros((C, Hp), cd).at[:, :H].set(w3.astype(cd))   # keep [out, in]
    b3p = b3.astype(f32).reshape(C, 1)

    return {"w1": w1p, "b1": b1p, "w2": w2p, "b2": b2p, "w3": w3p, "b3": b3p,
            "D": D, "H": H, "Hp": Hp, "C": C}


# ----------------------------------------------------------------------------
# Forward
# ----------------------------------------------------------------------------
def _jax_small_batch_forward(x, p):
    """Fused XLA path for tiny batches (a one-step kernel is launch-bound)."""
    cd = p["w1"].dtype
    h1 = jnp.maximum(jnp.dot(x.astype(cd), p["w1"],
                             preferred_element_type=jnp.float32) + p["b1"], 0.0)
    h2 = jnp.maximum(jnp.dot(h1.astype(cd), p["w2"],
                             preferred_element_type=jnp.float32) + p["b2"], 0.0)
    logits = jnp.dot(h2.astype(cd), p["w3"].T,
                     preferred_element_type=jnp.float32) + p["b3"].T
    return jax.nn.log_softmax(logits, axis=1)


def _pallas_forward(x, p):
    B, D = x.shape
    Hp, C = p["Hp"], p["C"]
    cd_itemsize = p["w1"].dtype.itemsize

    cap = _vmem_capacity_bytes()
    budget = int(0.6 * cap)                 # tiling budget (pipeline headroom)
    vmem_limit = int(min(cap, budget + (16 << 20)))
    bt = _pick_batch_tile(B, D, Hp, C, budget)
    grid = (_cdiv(B, bt),)

    cost = pl.CostEstimate(
        flops=2 * B * (D * Hp + Hp * Hp + Hp * C),
        transcendentals=B * (C + 1),
        bytes_accessed=(B * D * 4
                        + (D * Hp + Hp * Hp + C * Hp) * cd_itemsize
                        + (2 * Hp + C) * 4
                        + C * B * 4),
    )

    def run(single_buffer_weights):
        # Constant-index blocks (weights/biases) are fetched once; single
        # buffering halves their VMEM footprint with zero perf cost.
        ckw = ({"pipeline_mode": pl.Buffered(1)}
               if single_buffer_weights else {})
        in_specs = [
            pl.BlockSpec((bt, D), lambda i: (i, 0)),           # x tile (f32)
            pl.BlockSpec((D, Hp), lambda i: (0, 0), **ckw),    # w1
            pl.BlockSpec((1, Hp), lambda i: (0, 0), **ckw),    # b1
            pl.BlockSpec((Hp, Hp), lambda i: (0, 0), **ckw),   # w2
            pl.BlockSpec((1, Hp), lambda i: (0, 0), **ckw),    # b2
            pl.BlockSpec((C, Hp), lambda i: (0, 0), **ckw),    # w3 [out, in]
            pl.BlockSpec((C, 1), lambda i: (0, 0), **ckw),     # b3 column
        ]
        return pl.pallas_call(
            dan_kernel,
            out_shape=jax.ShapeDtypeStruct((C, B), jnp.float32),
            grid_spec=pltpu.PrefetchScalarGridSpec(
                num_scalar_prefetch=0,
                grid=grid,
                in_specs=in_specs,
                out_specs=pl.BlockSpec((C, bt), lambda i: (0, i)),
            ),
            compiler_params=pltpu.CompilerParams(
                dimension_semantics=("parallel",),
                vmem_limit_bytes=vmem_limit),
            cost_estimate=cost,
        )(x, p["w1"], p["b1"], p["w2"], p["b2"], p["w3"], p["b3"])

    try:
        out_t = run(True)
    except Exception:
        # pl.Buffered(1) not supported by this jax version -> default buffering.
        out_t = run(False)

    # Lane-dense [C, B] -> user-facing [B, C]; transpose of a [2, B] array is
    # negligible.  No batch padding was added, so no slicing is needed.
    return out_t.T


def nn3dan_forward(x, params, *, min_pallas_batch=32):
    """Eval-mode NN3DAN forward.  x: [B, D] float32.  Returns [B, C] log-probs."""
    B, D = x.shape
    assert D == params["D"], "feature dim mismatch with prepared params"
    if B < min_pallas_batch:
        return _jax_small_batch_forward(x, params)
    return _pallas_forward(x, params)


# ----------------------------------------------------------------------------
# Reference / init helpers
# ----------------------------------------------------------------------------
def _linear_init(key, fan_in, fan_out):
    """Deterministic PyTorch-style init, nn.Linear layout ([out, in], [out])."""
    kw, kb = jax.random.split(key)
    bound = 1.0 / jnp.sqrt(fan_in)
    w = jax.random.uniform(kw, (fan_out, fan_in), jnp.float32, -bound, bound)
    b = jax.random.uniform(kb, (fan_out,), jnp.float32, -bound, bound)
    return w, b


def _reference_forward(x, w1, b1, w2, b2, w3, b3, compute_dtype=jnp.bfloat16):
    """Pure-JAX reference with the same bf16-weights / f32-accumulate recipe."""
    cd = compute_dtype
    h1 = jnp.maximum(
        jnp.dot(x.astype(cd), w1.T.astype(cd),
                preferred_element_type=jnp.float32) + b1, 0.0)
    h2 = jnp.maximum(
        jnp.dot(h1.astype(cd), w2.T.astype(cd),
                preferred_element_type=jnp.float32) + b2, 0.0)
    logits = jnp.dot(h2.astype(cd), w3.T.astype(cd),
                     preferred_element_type=jnp.float32) + b3
    return jax.nn.log_softmax(logits, axis=1)


if __name__ == "__main__":
    # Small shapes consistent with the module: input_size=64, hidden=32, 2 classes.
    D, H, C = 64, 32, 2

    key = jax.random.PRNGKey(0)
    kx1, kx2, k1, k2, k3 = jax.random.split(key, 5)

    w1, b1 = _linear_init(k1, D, H)
    w2, b2 = _linear_init(k2, H, H)
    w3, b3 = _linear_init(k3, H, C)

    # One-time weight prep (transpose / pad / bf16), hoisted out of the forward.
    params = prepare_params(w1, b1, w2, b2, w3, b3)

    # Case 1: tiny batch (module-scale demo); force the Pallas path so the
    # kernel itself is exercised (by default tiny batches use the XLA path).
    B1 = 8
    x1 = jax.random.normal(kx1, (B1, D), jnp.float32)
    out1 = jax.block_until_ready(nn3dan_forward(x1, params, min_pallas_batch=1))
    ref1 = _reference_forward(x1, w1, b1, w2, b2, w3, b3)
    assert out1.shape == (B1, C)
    assert jnp.allclose(out1, ref1, atol=2e-2, rtol=2e-2), "mismatch (B=8)"
    assert jnp.allclose(jnp.sum(jnp.exp(out1), axis=1), 1.0, atol=1e-3)

    # Case 2: batch not a multiple of the tile -> >=2-step grid with a partial
    # last block and no host-side padding/cast of x.
    B2 = 300
    x2 = jax.random.normal(kx2, (B2, D), jnp.float32)
    out2 = jax.block_until_ready(nn3dan_forward(x2, params))
    ref2 = _reference_forward(x2, w1, b1, w2, b2, w3, b3)
    assert out2.shape == (B2, C)
    assert jnp.allclose(out2, ref2, atol=2e-2, rtol=2e-2), "mismatch (B=300)"
    assert jnp.allclose(jnp.sum(jnp.exp(out2), axis=1), 1.0, atol=1e-3)

    print("KERNEL_OK")
</pallas_src>

<mosaic_0001>
module attributes {stable_mosaic.version = 11 : i64} {
  func.func @dan_kernel(%arg0: i32, %arg1: memref<8x64xf32, #tpu.memory_space<vmem>>, %arg2: memref<64x128xbf16, #tpu.memory_space<vmem>>, %arg3: memref<1x128xf32, #tpu.memory_space<vmem>>, %arg4: memref<128x128xbf16, #tpu.memory_space<vmem>>, %arg5: memref<1x128xf32, #tpu.memory_space<vmem>>, %arg6: memref<2x128xbf16, #tpu.memory_space<vmem>>, %arg7: memref<2x1xf32, #tpu.memory_space<vmem>>, %arg8: memref<2x8xf32, #tpu.memory_space<vmem>>) attributes {dimension_semantics = [#tpu.dimension_semantics<parallel>], iteration_bounds = array<i64: 1>, scalar_prefetch = 0 : i64, scratch_operands = 0 : i64, tpu.core_type = #tpu.core_type<tc>, window_params = [{transform_indices = @transform_0, window_bounds = array<i64: 8, 64>}, {pipeline_mode = #tpu.pipeline_mode<synchronous>, transform_indices = @transform_1, window_bounds = array<i64: 64, 128>}, {pipeline_mode = #tpu.pipeline_mode<synchronous>, transform_indices = @transform_2, window_bounds = array<i64: 1, 128>}, {pipeline_mode = #tpu.pipeline_mode<synchronous>, transform_indices = @transform_3, window_bounds = array<i64: 128, 128>}, {pipeline_mode = #tpu.pipeline_mode<synchronous>, transform_indices = @transform_4, window_bounds = array<i64: 1, 128>}, {pipeline_mode = #tpu.pipeline_mode<synchronous>, transform_indices = @transform_5, window_bounds = array<i64: 2, 128>}, {pipeline_mode = #tpu.pipeline_mode<synchronous>, transform_indices = @transform_6, window_bounds = array<i64: 2, 1>}, {transform_indices = @transform_7, window_bounds = array<i64: 2, 8>}]} {
    %c0 = arith.constant 0 : index
    %c0_0 = arith.constant 0 : index
    %0 = vector.load %arg1[%c0, %c0_0] : memref<8x64xf32, #tpu.memory_space<vmem>>, vector<8x64xf32>
    %1 = arith.truncf %0 : vector<8x64xf32> to vector<8x64xbf16>
    %c0_1 = arith.constant 0 : index
    %c0_2 = arith.constant 0 : index
    %2 = vector.load %arg2[%c0_1, %c0_2] : memref<64x128xbf16, #tpu.memory_space<vmem>>, vector<64x128xbf16>
    %cst = arith.constant dense<0.000000e+00> : vector<8x128xf32>
    %3 = tpu.matmul %1, %2, %cst {dimension_numbers = #tpu.dot_dimension_numbers<[1], [0], [0], [1], [0, 0, 1, 1], [], []>} : vector<8x64xbf16>, vector<64x128xbf16>, vector<8x128xf32> -> vector<8x128xf32>
    %c0_3 = arith.constant 0 : index
    %c0_4 = arith.constant 0 : index
    %4 = vector.load %arg3[%c0_3, %c0_4] : memref<1x128xf32, #tpu.memory_space<vmem>>, vector<1x128xf32>
    %5 = vector.broadcast %4 : vector<1x128xf32> to vector<8x128xf32>
    %6 = arith.addf %3, %5 : vector<8x128xf32>
    %cst_5 = arith.constant 0.000000e+00 : f32
    %7 = vector.broadcast %cst_5 : f32 to vector<8x128xf32>
    %8 = arith.maximumf %6, %7 : vector<8x128xf32>
    %9 = arith.truncf %8 : vector<8x128xf32> to vector<8x128xbf16>
    %c0_6 = arith.constant 0 : index
    %c0_7 = arith.constant 0 : index
    %10 = vector.load %arg4[%c0_6, %c0_7] : memref<128x128xbf16, #tpu.memory_space<vmem>>, vector<128x128xbf16>
    %cst_8 = arith.constant dense<0.000000e+00> : vector<8x128xf32>
    %11 = tpu.matmul %9, %10, %cst_8 {dimension_numbers = #tpu.dot_dimension_numbers<[1], [0], [0], [1], [0, 0, 1, 1], [], []>} : vector<8x128xbf16>, vector<128x128xbf16>, vector<8x128xf32> -> vector<8x128xf32>
    %c0_9 = arith.constant 0 : index
    %c0_10 = arith.constant 0 : index
    %12 = vector.load %arg5[%c0_9, %c0_10] : memref<1x128xf32, #tpu.memory_space<vmem>>, vector<1x128xf32>
    %13 = vector.broadcast %12 : vector<1x128xf32> to vector<8x128xf32>
    %14 = arith.addf %11, %13 : vector<8x128xf32>
    %cst_11 = arith.constant 0.000000e+00 : f32
    %15 = vector.broadcast %cst_11 : f32 to vector<8x128xf32>
    %16 = arith.maximumf %14, %15 : vector<8x128xf32>
    %c0_12 = arith.constant 0 : index
    %c0_13 = arith.constant 0 : index
    %17 = vector.load %arg6[%c0_12, %c0_13] : memref<2x128xbf16, #tpu.memory_space<vmem>>, vector<2x128xbf16>
    %18 = arith.truncf %16 : vector<8x128xf32> to vector<8x128xbf16>
    %cst_14 = arith.constant dense<0.000000e+00> : vector<2x8xf32>
    %19 = tpu.matmul %17, %18, %cst_14 {dimension_numbers = #tpu.dot_dimension_numbers<[1], [1], [0], [0], [0, 0, 1, 0], [], []>} : vector<2x128xbf16>, vector<8x128xbf16>, vector<2x8xf32> -> vector<2x8xf32>
    %c0_15 = arith.constant 0 : index
    %c0_16 = arith.constant 0 : index
    %20 = vector.load %arg7[%c0_15, %c0_16] : memref<2x1xf32, #tpu.memory_space<vmem>>, vector<2x1xf32>
    %21 = vector.broadcast %20 : vector<2x1xf32> to vector<2x8xf32>
    %22 = arith.addf %19, %21 : vector<2x8xf32>
    %cst_17 = arith.constant dense<0xFF800000> : vector<8xf32>
    %23 = vector.multi_reduction <maximumf>, %22, %cst_17 [0] : vector<2x8xf32> to vector<8xf32>
    %24 = vector.shape_cast %23 : vector<8xf32> to vector<1x8xf32>
    %25 = vector.broadcast %24 : vector<1x8xf32> to vector<2x8xf32>
    %26 = arith.subf %22, %25 : vector<2x8xf32>
    %27 = math.exp %26 : vector<2x8xf32>
    %cst_18 = arith.constant dense<0.000000e+00> : vector<8xf32>
    %28 = vector.multi_reduction <add>, %27, %cst_18 [0] : vector<2x8xf32> to vector<8xf32>
    %29 = vector.shape_cast %28 : vector<8xf32> to vector<1x8xf32>
    %30 = math.log %29 : vector<1x8xf32>
    %31 = vector.broadcast %30 : vector<1x8xf32> to vector<2x8xf32>
    %32 = arith.subf %26, %31 : vector<2x8xf32>
    %c0_19 = arith.constant 0 : index
    %c0_20 = arith.constant 0 : index
    %33 = vector.load %arg8[%c0_19, %c0_20] : memref<2x8xf32, #tpu.memory_space<vmem>>, vector<2x8xf32>
    tpu.vector_store %arg8[%c0_19, %c0_20], %32 {strides = array<i32>} : memref<2x8xf32, #tpu.memory_space<vmem>>, vector<2x8xf32>,
    return
  }
  func.func @transform_0(%arg0: i32) -> (i32, i32) {
    %c0_i32 = arith.constant 0 : i32
    %c0_i32_0 = arith.constant 0 : i32
    return %arg0, %c0_i32 : i32, i32
  }
  func.func @transform_1(%arg0: i32) -> (i32, i32) {
    %c0_i32 = arith.constant 0 : i32
    %c0_i32_0 = arith.constant 0 : i32
    %c0_i32_1 = arith.constant 0 : i32
    return %c0_i32, %c0_i32_0 : i32, i32
  }
  func.func @transform_2(%arg0: i32) -> (i32, i32) {
    %c0_i32 = arith.constant 0 : i32
    %c0_i32_0 = arith.constant 0 : i32
    %c0_i32_1 = arith.constant 0 : i32
    return %c0_i32, %c0_i32_0 : i32, i32
  }
  func.func @transform_3(%arg0: i32) -> (i32, i32) {
    %c0_i32 = arith.constant 0 : i32
    %c0_i32_0 = arith.constant 0 : i32
    %c0_i32_1 = arith.constant 0 : i32
    return %c0_i32, %c0_i32_0 : i32, i32
  }
  func.func @transform_4(%arg0: i32) -> (i32, i32) {
    %c0_i32 = arith.constant 0 : i32
    %c0_i32_0 = arith.constant 0 : i32
    %c0_i32_1 = arith.constant 0 : i32
    return %c0_i32, %c0_i32_0 : i32, i32
  }
  func.func @transform_5(%arg0: i32) -> (i32, i32) {
    %c0_i32 = arith.constant 0 : i32
    %c0_i32_0 = arith.constant 0 : i32
    %c0_i32_1 = arith.constant 0 : i32
    return %c0_i32, %c0_i32_0 : i32, i32
  }
  func.func @transform_6(%arg0: i32) -> (i32, i32) {
    %c0_i32 = arith.constant 0 : i32
    %c0_i32_0 = arith.constant 0 : i32
    %c0_i32_1 = arith.constant 0 : i32
    return %c0_i32, %c0_i32_0 : i32, i32
  }
  func.func @transform_7(%arg0: i32) -> (i32, i32) {
    %c0_i32 = arith.constant 0 : i32
    %c0_i32_0 = arith.constant 0 : i32
    return %c0_i32, %arg0 : i32, i32
  }
}

module attributes {stable_mosaic.version = 11 : i64} {
  func.func @dan_kernel(%arg0: i32, %arg1: memref<8x64xf32, #tpu.memory_space<vmem>>, %arg2: memref<64x128xbf16, #tpu.memory_space<vmem>>, %arg3: memref<1x128xf32, #tpu.memory_space<vmem>>, %arg4: memref<128x128xbf16, #tpu.memory_space<vmem>>, %arg5: memref<1x128xf32, #tpu.memory_space<vmem>>, %arg6: memref<2x128xbf16, #tpu.memory_space<vmem>>, %arg7: memref<2x1xf32, #tpu.memory_space<vmem>>, %arg8: memref<2x8xf32, #tpu.memory_space<vmem>>) attributes {dimension_semantics = [#tpu.dimension_semantics<parallel>], iteration_bounds = array<i64: 1>, scalar_prefetch = 0 : i64, scratch_operands = 0 : i64, tpu.core_type = #tpu.core_type<tc>, window_params = [{transform_indices = @transform_0, window_bounds = array<i64: 8, 64>}, {pipeline_mode = #tpu.pipeline_mode<synchronous>, transform_indices = @transform_1, window_bounds = array<i64: 64, 128>}, {pipeline_mode = #tpu.pipeline_mode<synchronous>, transform_indices = @transform_2, window_bounds = array<i64: 1, 128>}, {pipeline_mode = #tpu.pipeline_mode<synchronous>, transform_indices = @transform_3, window_bounds = array<i64: 128, 128>}, {pipeline_mode = #tpu.pipeline_mode<synchronous>, transform_indices = @transform_4, window_bounds = array<i64: 1, 128>}, {pipeline_mode = #tpu.pipeline_mode<synchronous>, transform_indices = @transform_5, window_bounds = array<i64: 2, 128>}, {pipeline_mode = #tpu.pipeline_mode<synchronous>, transform_indices = @transform_6, window_bounds = array<i64: 2, 1>}, {transform_indices = @transform_7, window_bounds = array<i64: 2, 8>}]} {
    %c0 = arith.constant 0 : index
    %c0_0 = arith.constant 0 : index
    %0 = vector.load %arg1[%c0, %c0_0] : memref<8x64xf32, #tpu.memory_space<vmem>>, vector<8x64xf32>
    %1 = arith.truncf %0 : vector<8x64xf32> to vector<8x64xbf16>
    %c0_1 = arith.constant 0 : index
    %c0_2 = arith.constant 0 : index
    %2 = vector.load %arg2[%c0_1, %c0_2] : memref<64x128xbf16, #tpu.memory_space<vmem>>, vector<64x128xbf16>
    %cst = arith.constant dense<0.000000e+00> : vector<8x128xf32>
    %3 = tpu.matmul %1, %2, %cst {dimension_numbers = #tpu.dot_dimension_numbers<[1], [0], [0], [1], [0, 0, 1, 1], [], []>} : vector<8x64xbf16>, vector<64x128xbf16>, vector<8x128xf32> -> vector<8x128xf32>
    %c0_3 = arith.constant 0 : index
    %c0_4 = arith.constant 0 : index
    %4 = vector.load %arg3[%c0_3, %c0_4] : memref<1x128xf32, #tpu.memory_space<vmem>>, vector<1x128xf32>
    %5 = vector.broadcast %4 : vector<1x128xf32> to vector<8x128xf32>
    %6 = arith.addf %3, %5 : vector<8x128xf32>
    %cst_5 = arith.constant 0.000000e+00 : f32
    %7 = vector.broadcast %cst_5 : f32 to vector<8x128xf32>
    %8 = arith.maximumf %6, %7 : vector<8x128xf32>
    %9 = arith.truncf %8 : vector<8x128xf32> to vector<8x128xbf16>
    %c0_6 = arith.constant 0 : index
    %c0_7 = arith.constant 0 : index
    %10 = vector.load %arg4[%c0_6, %c0_7] : memref<128x128xbf16, #tpu.memory_space<vmem>>, vector<128x128xbf16>
    %cst_8 = arith.constant dense<0.000000e+00> : vector<8x128xf32>
    %11 = tpu.matmul %9, %10, %cst_8 {dimension_numbers = #tpu.dot_dimension_numbers<[1], [0], [0], [1], [0, 0, 1, 1], [], []>} : vector<8x128xbf16>, vector<128x128xbf16>, vector<8x128xf32> -> vector<8x128xf32>
    %c0_9 = arith.constant 0 : index
    %c0_10 = arith.constant 0 : index
    %12 = vector.load %arg5[%c0_9, %c0_10] : memref<1x128xf32, #tpu.memory_space<vmem>>, vector<1x128xf32>
    %13 = vector.broadcast %12 : vector<1x128xf32> to vector<8x128xf32>
    %14 = arith.addf %11, %13 : vector<8x128xf32>
    %cst_11 = arith.constant 0.000000e+00 : f32
    %15 = vector.broadcast %cst_11 : f32 to vector<8x128xf32>
    %16 = arith.maximumf %14, %15 : vector<8x128xf32>
    %c0_12 = arith.constant 0 : index
    %c0_13 = arith.constant 0 : index
    %17 = vector.load %arg6[%c0_12, %c0_13] : memref<2x128xbf16, #tpu.memory_space<vmem>>, vector<2x128xbf16>
    %18 = arith.truncf %16 : vector<8x128xf32> to vector<8x128xbf16>
    %cst_14 = arith.constant dense<0.000000e+00> : vector<2x8xf32>
    %19 = tpu.matmul %17, %18, %cst_14 {dimension_numbers = #tpu.dot_dimension_numbers<[1], [1], [0], [0], [0, 0, 1, 0], [], []>} : vector<2x128xbf16>, vector<8x128xbf16>, vector<2x8xf32> -> vector<2x8xf32>
    %c0_15 = arith.constant 0 : index
    %c0_16 = arith.constant 0 : index
    %20 = vector.load %arg7[%c0_15, %c0_16] : memref<2x1xf32, #tpu.memory_space<vmem>>, vector<2x1xf32>
    %21 = vector.broadcast %20 : vector<2x1xf32> to vector<2x8xf32>
    %22 = arith.addf %19, %21 : vector<2x8xf32>
    %cst_17 = arith.constant dense<0xFF800000> : vector<8xf32>
    %23 = vector.multi_reduction <maximumf>, %22, %cst_17 [0] : vector<2x8xf32> to vector<8xf32>
    %24 = vector.shape_cast %23 : vector<8xf32> to vector<1x8xf32>
    %25 = vector.broadcast %24 : vector<1x8xf32> to vector<2x8xf32>
    %26 = arith.subf %22, %25 : vector<2x8xf32>
    %27 = math.exp %26 : vector<2x8xf32>
    %cst_18 = arith.constant dense<0.000000e+00> : vector<8xf32>
    %28 = vector.multi_reduction <add>, %27, %cst_18 [0] : vector<2x8xf32> to vector<8xf32>
    %29 = vector.shape_cast %28 : vector<8xf32> to vector<1x8xf32>
    %30 = math.log %29 : vector<1x8xf32>
    %31 = vector.broadcast %30 : vector<1x8xf32> to vector<2x8xf32>
    %32 = arith.subf %26, %31 : vector<2x8xf32>
    %c0_19 = arith.constant 0 : index
    %c0_20 = arith.constant 0 : index
    %33 = vector.load %arg8[%c0_19, %c0_20] : memref<2x8xf32, #tpu.memory_space<vmem>>, vector<2x8xf32>
    tpu.vector_store %arg8[%c0_19, %c0_20], %32 {strides = array<i32>} : memref<2x8xf32, #tpu.memory_space<vmem>>, vector<2x8xf32>,
    return
  }
  func.func @transform_0(%arg0: i32) -> (i32, i32) {
    %c0_i32 = arith.constant 0 : i32
    %c0_i32_0 = arith.constant 0 : i32
    return %arg0, %c0_i32 : i32, i32
  }
  func.func @transform_1(%arg0: i32) -> (i32, i32) {
    %c0_i32 = arith.constant 0 : i32
    %c0_i32_0 = arith.constant 0 : i32
    %c0_i32_1 = arith.constant 0 : i32
    return %c0_i32, %c0_i32_0 : i32, i32
  }
  func.func @transform_2(%arg0: i32) -> (i32, i32) {
    %c0_i32 = arith.constant 0 : i32
    %c0_i32_0 = arith.constant 0 : i32
    %c0_i32_1 = arith.constant 0 : i32
    return %c0_i32, %c0_i32_0 : i32, i32
  }
  func.func @transform_3(%arg0: i32) -> (i32, i32) {
    %c0_i32 = arith.constant 0 : i32
    %c0_i32_0 = arith.constant 0 : i32
    %c0_i32_1 = arith.constant 0 : i32
    return %c0_i32, %c0_i32_0 : i32, i32
  }
  func.func @transform_4(%arg0: i32) -> (i32, i32) {
    %c0_i32 = arith.constant 0 : i32
    %c0_i32_0 = arith.constant 0 : i32
    %c0_i32_1 = arith.constant 0 : i32
    return %c0_i32, %c0_i32_0 : i32, i32
  }
  func.func @transform_5(%arg0: i32) -> (i32, i32) {
    %c0_i32 = arith.constant 0 : i32
    %c0_i32_0 = arith.constant 0 : i32
    %c0_i32_1 = arith.constant 0 : i32
    return %c0_i32, %c0_i32_0 : i32, i32
  }
  func.func @transform_6(%arg0: i32) -> (i32, i32) {
    %c0_i32 = arith.constant 0 : i32
    %c0_i32_0 = arith.constant 0 : i32
    %c0_i32_1 = arith.constant 0 : i32
    return %c0_i32, %c0_i32_0 : i32, i32
  }
  func.func @transform_7(%arg0: i32) -> (i32, i32) {
    %c0_i32 = arith.constant 0 : i32
    %c0_i32_0 = arith.constant 0 : i32
    return %c0_i32, %arg0 : i32, i32
  }
}

</mosaic_0001>

<bundles_post_ra>
// kernel: tpu_custom_call.1
= control target key start
LH: loop header
LB: loop body
LE: loop exit
PB: predicated region body
PF: predicated region fallthrough
CT: control target
= control target key end

     0   :  { %12 = vsyncpa [#allocation3], 0  ;;  %s524_s0 = inlined_call_operand.hbm [shape: f32[8,64], index: 0, kind: input, shape index: {}]   ;;  %s525_s1 = inlined_call_operand.hbm [shape: bf16[64,128], index: 1, kind: input, shape index: {}]   ;;  %s526_s2 = inlined_call_operand.vmem [shape: f32[1,128], index: 2, kind: input, shape index: {}]   ;;  %s527_s3 = inlined_call_operand.hbm [shape: bf16[128,128], index: 3, kind: input, shape index: {}]   ;;  %s528_s4 = inlined_call_operand.vmem [shape: f32[1,128], index: 4, kind: input, shape index: {}]   ;;  %s529_s5 = inlined_call_operand.vmem [shape: bf16[2,128], index: 5, kind: input, shape index: {}]   ;;  %s530_s6 = inlined_call_operand.vmem [shape: f32[2,1], index: 6, kind: input, shape index: {}]   ;;  %s531_s7 = inlined_call_operand.hbm [shape: f32[2,8], index: 7, kind: output, shape index: {}]  }
   0x1   :  { %13 = vsyncpa [#allocation6], 0  ;;  %s30_s26 = sshll.u32 %s525_s1, 4  ;;  %s31_s26 = int_to_ptr.hbm [resolvable:$true] %s30_s26 }
   0x2   :  { %14 = vsyncpa [#allocation4], 0  ;;  %s450_s27 = smov [#allocation5]   ;;  %s20_s8 = sshll.u32 %s524_s0, 4  ;;  %s21_s8 = int_to_ptr.hbm [resolvable:$true] %s20_s8 }
   0x3   :  { %s32_s28 = sshll.u32 %s450_s27, 4  ;;  %s451_s9 = smov 64   ;;  %s33_s28 = int_to_ptr.vmem [resolvable:$true] %s32_s28 }
   0x4   :  { %s452_s10 = smov 4   ;;  %s453_s11 = smov [#allocation2]  }
   0x5   :  { %38 = dma.hbm_to_vmem [thread:$0]  %s31_s26, 512, %s33_s28, [#allocation6], %s451_s9, %s451_s9, %s452_s10  }
   0x6   :  { %s22_s12 = sshll.u32 %s453_s11, 4  ;;  %s45_s15 = sshll.u32 %s527_s3, 4  ;;  %s23_s12 = int_to_ptr.vmem [resolvable:$true] %s22_s12  ;;  %s46_s15 = int_to_ptr.hbm [resolvable:$true] %s45_s15 }
   0x7   :  { %25 = dma.hbm_to_vmem [thread:$0]  %s21_s8, 128, %s23_s12, [#allocation3]  }
   0x8   :  { %s454_s1 = smov [#allocation7]  }
   0x9   :  { %s47_s16 = sshll.u32 %s454_s1, 4  ;;  %s48_s16 = int_to_ptr.vmem [resolvable:$true] %s47_s16 }
   0xa   :  { %53 = dma.hbm_to_vmem [thread:$0]  %s46_s15, 1024, %s48_s16, [#allocation6], %s451_s9, %s451_s9, %s452_s10  }
   0xb   :  { %444 = dma.done.wait [#allocation3], 128  }
   0xc   :  { %445 = vsyncadd [#allocation3], 4294967168 }
   0xd   :  { %446 = dma.done.wait [#allocation6], 1536  }
   0xe   :  { %447 = vsyncadd [#allocation6], 4294965760  ;;  %v325_v0 = vld [vmem:[#allocation5 + $0x18] sm:$0xff]  ;;  %v324_v2 = vld [vmem:[#allocation5 + $0x10] sm:$0xff]  ;;  %vm111_vm0 = vcmask 523264   ;;  %v455_v21 = vmov 0  }
   0xf   :  { %v333_v1 = vld [vmem:[#allocation7 + $0x38] sm:$0xff]  ;;  %119 = vmatpush.bf16.msra.mxu0 %v325_v0  ;;  %v332_v3 = vld [vmem:[#allocation7 + $0x30] sm:$0xff]  ;;  %v323_v4 = vld [vmem:[#allocation5 + $0x8] sm:$0xff]  ;;  %341 = vset.pattern.permute.xlu0 %v455_v21  ;;  %vm233_vm1 = vcmask 58368   ;;  %s262_s23 = sshll.u32 %s531_s7, 4  ;;  %s263_s23 = int_to_ptr.hbm [resolvable:$true] %s262_s23 }
  0x10   :  { %198 = vmatpush.bf16.msra.mxu1 %v333_v1  ;;  %v331_v5 = vld [vmem:[#allocation7 + $0x28] sm:$0xff]  ;;  %v322_v6 = vld [vmem:[#allocation5] sm:$0xff]  ;;  %v73_v7 = vld [vmem:[#allocation2] sm:$0xff] }
  0x11   :  { %v330_v8 = vld [vmem:[#allocation7 + $0x20] sm:$0xff]  ;;  %v74_v9 = vpack.c.bf16 %v73_v7, %v73_v7  ;;  %v329_v10 = vld [vmem:[#allocation7 + $0x18] sm:$0xff]  ;;  %v328_v11 = vld [vmem:[#allocation7 + $0x10] sm:$0xff] }
  0x12   :  { %v327_v12 = vld [vmem:[#allocation7 + $0x8] sm:$0xff]  ;;  %v326_v13 = vld [vmem:[#allocation7] sm:$0xff]  ;;  %v342_v14 = vld [vmem:[%s526_s2] ss:$0 sm:$0xff] }
  0x13   :  { %120 = vmatpush.bf16.msra.mxu0 %v324_v2  ;;  %v214_v20 = vld [vmem:[%s530_s6] sm:$0x3] }
  0x14   :  { %199 = vmatpush.bf16.msra.mxu1 %v332_v3  ;;  %217 = vperm.xlu0 %341, %v214_v20   ;;  %v343_v22 = vld [vmem:[%s528_s4] ss:$0 sm:$0xff]  ;;  %s456_s4 = smov [#allocation8]  }
  0x15   :  { %v212_v28 = vld [vmem:[%s529_s5] sm:$0x1]  ;;  %s260_s5 = sshll.u32 %s456_s4, 4  ;;  %s261_s5 = int_to_ptr.vmem [resolvable:$true] %s260_s5 }
  0x17   :  { %121 = vmatpush.bf16.msra.mxu0 %v323_v4 }
  0x18   :  { %200 = vmatpush.bf16.msra.mxu1 %v331_v5 }
  0x1b   :  { %122 = vmatpush.bf16.msra.mxu0 %v322_v6 }
  0x1c   :  { %201 = vmatpush.bf16.msra.mxu1 %v330_v8 }
  0x1e   :  { %289 = vmatmul.msk.bf16.vlgmr.msra.gmra.mxu0 %vm111_vm0, %v74_v9 }
  0x20   :  { %202 = vmatpush.bf16.msra.mxu1 %v329_v10 }
  0x24   :  { %203 = vmatpush.bf16.msra.mxu1 %v328_v11 }
  0x28   :  { %204 = vmatpush.bf16.msra.mxu1 %v327_v12 }
  0x2c   :  { %205 = vmatpush.bf16.msra.mxu1 %v326_v13 }
  0x86   :  { %v218_v29 = vpop.permute.xlu0 %217 }
  0x9b   :  { %v124_v15 = vpop.f32.mrf.mxu0 }
  0x9c   :  { %v125_v16 = vadd.f32 %v342_v14, %v124_v15 }
  0x9e   :  { %v128_v17 = vmax.f32 %v125_v16, 0.0 }
  0xa0   :  { %v129_v18 = vpack.c.bf16 %v128_v17, %v128_v17 }
  0xa2   :  { %206 = vmatmul.bf16.vlgmr.msra.gmra.mxu1 %v129_v18 }
  0xa3   :  { %v126_v19 = vpop.f32.mrf.mxu0 }
 0x11f   :  { %v207_v23 = vpop.f32.mrf.mxu1 }
 0x120   :  { %v208_v24 = vadd.f32 %v343_v22, %v207_v23 }
 0x122   :  { %v211_v25 = vmax.f32 %v208_v24, 0.0 }
 0x124   :  { %v213_v26 = vpack.c.bf16 %v211_v25, %v211_v25 }
 0x126   :  { %227 = vmatpush.bf16.xpose.msra.mxu2 %v213_v26 }
 0x127   :  { %v209_v27 = vpop.f32.mrf.mxu1 }
 0x12d   :  { %228 = vmatmul.bf16.vlgmr.msra.gmra.mxu2 %v212_v28 }
 0x1b0   :  { %v229_v30 = vpop.f32.mrf.mxu2 }
 0x1b1   :  { %v230_v31 = vadd.f32 %v229_v30, %v218_v29 }
 0x1b3   :  { %v234_v32 = vsel %vm233_vm1, %v230_v31, -inf }
 0x1b4   :  { %v235_v33 = vrot.slane %v234_v32, 4 }
 0x1b6   :  { %v236_v34 = vmax.f32 %v234_v32, %v235_v33 }
 0x1b8   :  { %v237_v35 = vrot.slane %v236_v34, 2  ;;  %v231_v36 = vpop.f32.mrf.mxu2 }
 0x1ba   :  { %v238_v37 = vmax.f32 %v236_v34, %v237_v35 }
 0x1bc   :  { %v239_v38 = vrot.slane %v238_v37, 1 }
 0x1be   :  { %v240_v39 = vmax.f32 %v238_v37, %v239_v38 }
 0x1c0   :  { %v241_v40 = vsub.f32 %v230_v31, %v240_v39 }
 0x1c2   :  { %v242_v41 = vmul.f32 1.442695, %v241_v40 }
 0x1c4   :  { %344 = vpow2.f32 %v242_v41 }
 0x1ca   :  { %v345_v42 = vpop.eup %344 }
 0x1cb   :  { %v244_v43 = vsel %vm233_vm1, %v345_v42, 0.0 }
 0x1cc   :  { %v245_v44 = vrot.slane %v244_v43, 4 }
 0x1ce   :  { %v246_v45 = vadd.f32 %v245_v44, %v244_v43 }
 0x1d0   :  { %v247_v46 = vrot.slane %v246_v45, 2 }
 0x1d2   :  { %v248_v47 = vadd.f32 %v247_v46, %v246_v45 }
 0x1d4   :  { %v249_v48 = vrot.slane %v248_v47, 1 }
 0x1d6   :  { %v250_v49 = vadd.f32 %v249_v48, %v248_v47 }
 0x1d8   :  { %346 = vlog2.f32 %v250_v49 }
 0x1de   :  { %v347_v50 = vpop.eup %346 }
 0x1df   :  { %v252_v51 = vmul.f32 0.6931472, %v347_v50 }
 0x1e1   :  { %v253_v52 = vsub.f32 %v241_v40, %v252_v51 }
 0x1e3   :  { %254 = vst.msk [vmem:[#allocation8] sm:$0x3] %vm233_vm1, %v253_v52 }
 0x1e4   :  { %265 = dma.vmem_to_hbm [thread:$0]  %s261_s5, 32, %s263_s23, [#allocation4]  }
 0x1e5   :  { %448 = dma.done.wait [#allocation4], 32  }
 0x1e6   :  { %449 = vsyncadd [#allocation4], 4294967264 }
 0x1e7   :  { %270 = vsyncpa [#allocation3], 1 }
 0x1e8   :  { %271 = vsyncpa [#allocation6], 1 }
 0x1e9   :  { %272 = vsyncpa [#allocation4], 1 }

// kernel: tpu_custom_call.1
= control target key start
LH: loop header
LB: loop body
LE: loop exit
PB: predicated region body
PF: predicated region fallthrough
CT: control target
= control target key end

     0   :  { %12 = vsyncpa [#allocation3], 0  ;;  %s524_s0 = inlined_call_operand.hbm [shape: f32[8,64], index: 0, kind: input, shape index: {}]   ;;  %s525_s1 = inlined_call_operand.hbm [shape: bf16[64,128], index: 1, kind: input, shape index: {}]   ;;  %s526_s2 = inlined_call_operand.vmem [shape: f32[1,128], index: 2, kind: input, shape index: {}]   ;;  %s527_s3 = inlined_call_operand.hbm [shape: bf16[128,128], index: 3, kind: input, shape index: {}]   ;;  %s528_s4 = inlined_call_operand.vmem [shape: f32[1,128], index: 4, kind: input, shape index: {}]   ;;  %s529_s5 = inlined_call_operand.vmem [shape: bf16[2,128], index: 5, kind: input, shape index: {}]   ;;  %s530_s6 = inlined_call_operand.vmem [shape: f32[2,1], index: 6, kind: input, shape index: {}]   ;;  %s531_s7 = inlined_call_operand.hbm [shape: f32[2,8], index: 7, kind: output, shape index: {}]  }
   0x1   :  { %13 = vsyncpa [#allocation6], 0  ;;  %s30_s26 = sshll.u32 %s525_s1, 4  ;;  %s31_s26 = int_to_ptr.hbm [resolvable:$true] %s30_s26 }
   0x2   :  { %14 = vsyncpa [#allocation4], 0  ;;  %s450_s27 = smov [#allocation5]   ;;  %s20_s8 = sshll.u32 %s524_s0, 4  ;;  %s21_s8 = int_to_ptr.hbm [resolvable:$true] %s20_s8 }
   0x3   :  { %s32_s28 = sshll.u32 %s450_s27, 4  ;;  %s451_s9 = smov 64   ;;  %s33_s28 = int_to_ptr.vmem [resolvable:$true] %s32_s28 }
   0x4   :  { %s452_s10 = smov 4   ;;  %s453_s11 = smov [#allocation2]  }
   0x5   :  { %38 = dma.hbm_to_vmem [thread:$0]  %s31_s26, 512, %s33_s28, [#allocation6], %s451_s9, %s451_s9, %s452_s10  }
   0x6   :  { %s22_s12 = sshll.u32 %s453_s11, 4  ;;  %s45_s15 = sshll.u32 %s527_s3, 4  ;;  %s23_s12 = int_to_ptr.vmem [resolvable:$true] %s22_s12  ;;  %s46_s15 = int_to_ptr.hbm [resolvable:$true] %s45_s15 }
   0x7   :  { %25 = dma.hbm_to_vmem [thread:$0]  %s21_s8, 128, %s23_s12, [#allocation3]  }
   0x8   :  { %s454_s1 = smov [#allocation7]  }
   0x9   :  { %s47_s16 = sshll.u32 %s454_s1, 4  ;;  %s48_s16 = int_to_ptr.vmem [resolvable:$true] %s47_s16 }
   0xa   :  { %53 = dma.hbm_to_vmem [thread:$0]  %s46_s15, 1024, %s48_s16, [#allocation6], %s451_s9, %s451_s9, %s452_s10  }
   0xb   :  { %444 = dma.done.wait [#allocation3], 128  }
   0xc   :  { %445 = vsyncadd [#allocation3], 4294967168 }
   0xd   :  { %446 = dma.done.wait [#allocation6], 1536  }
   0xe   :  { %447 = vsyncadd [#allocation6], 4294965760  ;;  %v325_v0 = vld [vmem:[#allocation5 + $0x18] sm:$0xff]  ;;  %v324_v2 = vld [vmem:[#allocation5 + $0x10] sm:$0xff]  ;;  %vm111_vm0 = vcmask 523264   ;;  %v455_v21 = vmov 0  }
   0xf   :  { %v333_v1 = vld [vmem:[#allocation7 + $0x38] sm:$0xff]  ;;  %119 = vmatpush.bf16.msra.mxu0 %v325_v0  ;;  %v332_v3 = vld [vmem:[#allocation7 + $0x30] sm:$0xff]  ;;  %v323_v4 = vld [vmem:[#allocation5 + $0x8] sm:$0xff]  ;;  %341 = vset.pattern.permute.xlu0 %v455_v21  ;;  %vm233_vm1 = vcmask 58368   ;;  %s262_s23 = sshll.u32 %s531_s7, 4  ;;  %s263_s23 = int_to_ptr.hbm [resolvable:$true] %s262_s23 }
  0x10   :  { %198 = vmatpush.bf16.msra.mxu1 %v333_v1  ;;  %v331_v5 = vld [vmem:[#allocation7 + $0x28] sm:$0xff]  ;;  %v322_v6 = vld [vmem:[#allocation5] sm:$0xff]  ;;  %v73_v7 = vld [vmem:[#allocation2] sm:$0xff] }
  0x11   :  { %v330_v8 = vld [vmem:[#allocation7 + $0x20] sm:$0xff]  ;;  %v74_v9 = vpack.c.bf16 %v73_v7, %v73_v7  ;;  %v329_v10 = vld [vmem:[#allocation7 + $0x18] sm:$0xff]  ;;  %v328_v11 = vld [vmem:[#allocation7 + $0x10] sm:$0xff] }
  0x12   :  { %v327_v12 = vld [vmem:[#allocation7 + $0x8] sm:$0xff]  ;;  %v326_v13 = vld [vmem:[#allocation7] sm:$0xff]  ;;  %v342_v14 = vld [vmem:[%s526_s2] ss:$0 sm:$0xff] }
  0x13   :  { %120 = vmatpush.bf16.msra.mxu0 %v324_v2  ;;  %v214_v20 = vld [vmem:[%s530_s6] sm:$0x3] }
  0x14   :  { %199 = vmatpush.bf16.msra.mxu1 %v332_v3  ;;  %217 = vperm.xlu0 %341, %v214_v20   ;;  %v343_v22 = vld [vmem:[%s528_s4] ss:$0 sm:$0xff]  ;;  %s456_s4 = smov [#allocation8]  }
  0x15   :  { %v212_v28 = vld [vmem:[%s529_s5] sm:$0x1]  ;;  %s260_s5 = sshll.u32 %s456_s4, 4  ;;  %s261_s5 = int_to_ptr.vmem [resolvable:$true] %s260_s5 }
  0x17   :  { %121 = vmatpush.bf16.msra.mxu0 %v323_v4 }
  0x18   :  { %200 = vmatpush.bf16.msra.mxu1 %v331_v5 }
  0x1b   :  { %122 = vmatpush.bf16.msra.mxu0 %v322_v6 }
  0x1c   :  { %201 = vmatpush.bf16.msra.mxu1 %v330_v8 }
  0x1e   :  { %289 = vmatmul.msk.bf16.vlgmr.msra.gmra.mxu0 %vm111_vm0, %v74_v9 }
  0x20   :  { %202 = vmatpush.bf16.msra.mxu1 %v329_v10 }
  0x24   :  { %203 = vmatpush.bf16.msra.mxu1 %v328_v11 }
  0x28   :  { %204 = vmatpush.bf16.msra.mxu1 %v327_v12 }
  0x2c   :  { %205 = vmatpush.bf16.msra.mxu1 %v326_v13 }
  0x86   :  { %v218_v29 = vpop.permute.xlu0 %217 }
  0x9b   :  { %v124_v15 = vpop.f32.mrf.mxu0 }
  0x9c   :  { %v125_v16 = vadd.f32 %v342_v14, %v124_v15 }
  0x9e   :  { %v128_v17 = vmax.f32 %v125_v16, 0.0 }
  0xa0   :  { %v129_v18 = vpack.c.bf16 %v128_v17, %v128_v17 }
  0xa2   :  { %206 = vmatmul.bf16.vlgmr.msra.gmra.mxu1 %v129_v18 }
  0xa3   :  { %v126_v19 = vpop.f32.mrf.mxu0 }
 0x11f   :  { %v207_v23 = vpop.f32.mrf.mxu1 }
 0x120   :  { %v208_v24 = vadd.f32 %v343_v22, %v207_v23 }
 0x122   :  { %v211_v25 = vmax.f32 %v208_v24, 0.0 }
 0x124   :  { %v213_v26 = vpack.c.bf16 %v211_v25, %v211_v25 }
 0x126   :  { %227 = vmatpush.bf16.xpose.msra.mxu2 %v213_v26 }
 0x127   :  { %v209_v27 = vpop.f32.mrf.mxu1 }
 0x12d   :  { %228 = vmatmul.bf16.vlgmr.msra.gmra.mxu2 %v212_v28 }
 0x1b0   :  { %v229_v30 = vpop.f32.mrf.mxu2 }
 0x1b1   :  { %v230_v31 = vadd.f32 %v229_v30, %v218_v29 }
 0x1b3   :  { %v234_v32 = vsel %vm233_vm1, %v230_v31, -inf }
 0x1b4   :  { %v235_v33 = vrot.slane %v234_v32, 4 }
 0x1b6   :  { %v236_v34 = vmax.f32 %v234_v32, %v235_v33 }
 0x1b8   :  { %v237_v35 = vrot.slane %v236_v34, 2  ;;  %v231_v36 = vpop.f32.mrf.mxu2 }
 0x1ba   :  { %v238_v37 = vmax.f32 %v236_v34, %v237_v35 }
 0x1bc   :  { %v239_v38 = vrot.slane %v238_v37, 1 }
 0x1be   :  { %v240_v39 = vmax.f32 %v238_v37, %v239_v38 }
 0x1c0   :  { %v241_v40 = vsub.f32 %v230_v31, %v240_v39 }
 0x1c2   :  { %v242_v41 = vmul.f32 1.442695, %v241_v40 }
 0x1c4   :  { %344 = vpow2.f32 %v242_v41 }
 0x1ca   :  { %v345_v42 = vpop.eup %344 }
 0x1cb   :  { %v244_v43 = vsel %vm233_vm1, %v345_v42, 0.0 }
 0x1cc   :  { %v245_v44 = vrot.slane %v244_v43, 4 }
 0x1ce   :  { %v246_v45 = vadd.f32 %v245_v44, %v244_v43 }
 0x1d0   :  { %v247_v46 = vrot.slane %v246_v45, 2 }
 0x1d2   :  { %v248_v47 = vadd.f32 %v247_v46, %v246_v45 }
 0x1d4   :  { %v249_v48 = vrot.slane %v248_v47, 1 }
 0x1d6   :  { %v250_v49 = vadd.f32 %v249_v48, %v248_v47 }
 0x1d8   :  { %346 = vlog2.f32 %v250_v49 }
 0x1de   :  { %v347_v50 = vpop.eup %346 }
 0x1df   :  { %v252_v51 = vmul.f32 0.6931472, %v347_v50 }
 0x1e1   :  { %v253_v52 = vsub.f32 %v241_v40, %v252_v51 }
 0x1e3   :  { %254 = vst.msk [vmem:[#allocation8] sm:$0x3] %vm233_vm1, %v253_v52 }
 0x1e4   :  { %265 = dma.vmem_to_hbm [thread:$0]  %s261_s5, 32, %s263_s23, [#allocation4]  }
 0x1e5   :  { %448 = dma.done.wait [#allocation4], 32  }
 0x1e6   :  { %449 = vsyncadd [#allocation4], 4294967264 }
 0x1e7   :  { %270 = vsyncpa [#allocation3], 1 }
 0x1e8   :  { %271 = vsyncpa [#allocation6], 1 }
 0x1e9   :  { %272 = vsyncpa [#allocation4], 1 }

</bundles_post_ra>
